<compile_context>
chip_gen: v7x
topology: tpu7x:2x2x1
jax: 0.10.0
libtpu: 0.0.40
codegen_flags: <defaults>
</compile_context>

<pallas_src>
import functools

import jax
import jax.numpy as jnp
from jax.experimental import pallas as pl
from jax.experimental.pallas import tpu as pltpu

_MIB = 1024 * 1024


def _round_up(x, m):
    return (x + m - 1) // m * m


def _device_kind():
    try:
        return jax.devices()[0].device_kind.lower()
    except Exception:
        return ""


def _tpu_defaults():
    """Returns (tm_default, vmem_limit_bytes, resident_weight_budget, multi_core)."""
    kind = _device_kind()
    if "v7" in kind:
        # 64 MiB VMEM/TC but very high HBM BW -> modest tm already hides streaming.
        return 512, 48 * _MIB, 16 * _MIB, True
    if "v6" in kind:
        # 128 MiB VMEM; 918 TF/s vs ~1.3 TB/s HBM -> want tm ~1024 when streaming.
        return 1024, 96 * _MIB, 32 * _MIB, False
    if "v5e" in kind or "v5 lite" in kind or "v5lite" in kind:
        return 512, 96 * _MIB, 32 * _MIB, False
    # Unknown / other generations: conservative VMEM, assume possible megacore.
    return 512, 48 * _MIB, 16 * _MIB, ("v4" in kind or "v5p" in kind or "v5 p" in kind)


def _layer_norm_epilogue(y, x_res_f32, g, b, eps):
    """Residual add + LayerNorm with one-pass statistics (single tile traversal)."""
    z = y + x_res_f32
    inv_d = 1.0 / z.shape[-1]
    s1 = jnp.sum(z, axis=-1, keepdims=True)
    s2 = jnp.sum(z * z, axis=-1, keepdims=True)
    mean = s1 * inv_d
    var = s2 * inv_d - mean * mean
    return (z - mean) * jax.lax.rsqrt(var + eps) * g + b


def _ffn_resident_kernel(x_ref, w1_ref, b1_ref, w2_ref, b2_ref, g_ref, beta_ref,
                         o_ref, *, eps):
    """One (tm, d_in) row tile; full w1/w2 resident in VMEM (1-D grid)."""
    x = x_ref[...]
    h = jnp.dot(x, w1_ref[...], preferred_element_type=jnp.float32)
    h = jnp.maximum(h + b1_ref[...], 0.0)               # bias + ReLU
    y = jnp.dot(h.astype(x.dtype), w2_ref[...], preferred_element_type=jnp.float32)
    y = y + b2_ref[...]
    out = _layer_norm_epilogue(y, x.astype(jnp.float32), g_ref[...], beta_ref[...], eps)
    o_ref[...] = out.astype(o_ref.dtype)


def _ffn_streamed_kernel(x_ref, w1_ref, b1_ref, w2_ref, b2_ref, g_ref, beta_ref,
                         o_ref, acc_ref, *, eps):
    """One (tm, d_in) row tile x one tk-wide d_hid chunk (reduction axis last)."""
    k = pl.program_id(1)

    @pl.when(k == 0)
    def _():
        acc_ref[...] = jnp.zeros_like(acc_ref)

    x = x_ref[...]
    h = jnp.dot(x, w1_ref[...], preferred_element_type=jnp.float32)
    h = jnp.maximum(h + b1_ref[...], 0.0)               # exact per-chunk (ReLU is pointwise)
    acc_ref[...] += jnp.dot(h.astype(x.dtype), w2_ref[...],
                            preferred_element_type=jnp.float32)

    @pl.when(k == pl.num_programs(1) - 1)
    def _():
        y = acc_ref[...] + b2_ref[...]
        out = _layer_norm_epilogue(y, x.astype(jnp.float32),
                                   g_ref[...], beta_ref[...], eps)
        o_ref[...] = out.astype(o_ref.dtype)


def positionwise_ffn(x, w1, b1, w2, b2, gamma, beta, *, eps=1e-5,
                     tm=None, tk=1024, compute_dtype=None, vmem_limit_bytes=None):
    """x: (B, L, d_in); w1: (d_in, d_hid); w2: (d_hid, d_in)."""
    B, L, d_in = x.shape
    d_hid = w1.shape[1]
    rows = B * L
    out_dtype = x.dtype

    tm_default, vmem_default, w_budget, multi_core = _tpu_defaults()
    if tm is None:
        tm = tm_default
    if vmem_limit_bytes is None:
        vmem_limit_bytes = vmem_default
    budget = int(0.8 * vmem_limit_bytes)                 # headroom for compiler scratch

    # Optional lower-precision compute path (e.g. bf16 on v5e for f32 inputs);
    # default keeps the input dtype so results match the f32 reference exactly.
    if compute_dtype is None:
        compute_dtype = x.dtype
    in_item = jnp.dtype(compute_dtype).itemsize
    out_item = jnp.dtype(out_dtype).itemsize

    # ----- row tile -----------------------------------------------------------
    tm = min(tm, _round_up(rows, 8))
    # Multi-TensorCore parts: keep >= 2 steps on the parallel row axis.
    if multi_core and rows > 256:
        while _round_up(rows, tm) // tm < 2 and tm > 256:
            tm = max(256, (tm // 2) // 8 * 8)

    # ----- weights-resident vs streamed decision ------------------------------
    wbytes = 2 * d_in * d_hid * in_item                  # one copy of w1 + w2

    def _resident_vmem(tm_):
        wts = 2 * wbytes                                 # pipeline buffers for weights
        io = 2 * tm_ * d_in * (in_item + out_item)       # double-buffered x / out tiles
        interm = tm_ * d_hid * (4 + in_item)             # f32 h + cast for 2nd matmul
        epi = 4 * tm_ * d_in * 4                         # f32 epilogue temporaries
        small = (2 * d_hid + 6 * d_in) * 4
        return wts + io + interm + epi + small

    use_resident = wbytes <= w_budget
    tm_res = tm
    if use_resident:
        while _resident_vmem(tm_res) > budget and tm_res > 64:
            tm_res = max(64, (tm_res // 2) // 8 * 8)
        use_resident = _resident_vmem(tm_res) <= budget

    # ----- operand prep -------------------------------------------------------
    x2d = x.reshape(rows, d_in).astype(compute_dtype)
    w1c = w1.astype(compute_dtype)
    w2c = w2.astype(compute_dtype)
    b1f = b1.astype(jnp.float32)
    b2_2d = b2.reshape(1, d_in).astype(jnp.float32)
    g_2d = gamma.reshape(1, d_in).astype(jnp.float32)
    beta_2d = beta.reshape(1, d_in).astype(jnp.float32)

    if use_resident:
        # ======================= weights-resident fast path =====================
        tm = tm_res
        rows_p = _round_up(rows, tm)
        if rows_p != rows:
            x2d = jnp.pad(x2d, ((0, rows_p - rows), (0, 0)))
        b1_2d = b1f.reshape(1, d_hid)

        bytes_accessed = (rows_p * d_in * (in_item + out_item)
                          + wbytes + (2 * d_hid + 3 * d_in) * 4)
        cost = pl.CostEstimate(flops=4 * rows_p * d_in * d_hid,
                               transcendentals=rows_p,
                               bytes_accessed=int(bytes_accessed))

        out2d = pl.pallas_call(
            functools.partial(_ffn_resident_kernel, eps=eps),
            out_shape=jax.ShapeDtypeStruct((rows_p, d_in), out_dtype),
            grid_spec=pltpu.PrefetchScalarGridSpec(
                num_scalar_prefetch=0,
                grid=(rows_p // tm,),
                in_specs=[
                    pl.BlockSpec((tm, d_in), lambda i: (i, 0)),      # x rows
                    pl.BlockSpec((d_in, d_hid), lambda i: (0, 0)),   # w1 (resident)
                    pl.BlockSpec((1, d_hid), lambda i: (0, 0)),      # b1
                    pl.BlockSpec((d_hid, d_in), lambda i: (0, 0)),   # w2 (resident)
                    pl.BlockSpec((1, d_in), lambda i: (0, 0)),       # b2
                    pl.BlockSpec((1, d_in), lambda i: (0, 0)),       # gamma
                    pl.BlockSpec((1, d_in), lambda i: (0, 0)),       # beta
                ],
                out_specs=pl.BlockSpec((tm, d_in), lambda i: (i, 0)),
            ),
            compiler_params=pltpu.CompilerParams(
                dimension_semantics=("parallel",),
                vmem_limit_bytes=vmem_limit_bytes),
            cost_estimate=cost,
        )(x2d, w1c, b1_2d, w2c, b2_2d, g_2d, beta_2d)
    else:
        # ========================== streamed fallback ===========================
        # Pad d_hid (zero columns of w1/b1 and zero rows of w2 contribute nothing,
        # and ReLU(0) = 0), instead of the old "tk = d_hid" VMEM-blowup fallback.
        if d_hid <= tk:
            tk_eff = d_hid
            d_hid_p = d_hid
        else:
            d_hid_p = _round_up(d_hid, 256)
            tk_eff = 256
            t = (tk // 256) * 256
            while t >= 256:
                if d_hid_p % t == 0:
                    tk_eff = t
                    break
                t -= 256

        def _streamed_vmem(tm_, tk_):
            io = 2 * tm_ * d_in * (in_item + out_item)
            wts = 2 * (2 * d_in * tk_) * in_item          # double-buffered w1/w2 chunks
            acc = tm_ * d_in * 4
            interm = tm_ * tk_ * (4 + in_item)
            epi = 4 * tm_ * d_in * 4
            small = (2 * tk_ + 6 * d_in) * 4
            return io + wts + acc + interm + epi + small

        while _streamed_vmem(tm, tk_eff) > budget and tm > 64:
            tm = max(64, (tm // 2) // 8 * 8)

        rows_p = _round_up(rows, tm)
        if rows_p != rows:
            x2d = jnp.pad(x2d, ((0, rows_p - rows), (0, 0)))
        if d_hid_p != d_hid:
            pad_h = d_hid_p - d_hid
            w1c = jnp.pad(w1c, ((0, 0), (0, pad_h)))
            w2c = jnp.pad(w2c, ((0, pad_h), (0, 0)))
            b1f = jnp.pad(b1f, (0, pad_h))
        b1_2d = b1f.reshape(1, d_hid_p)

        n_row_tiles = rows_p // tm
        bytes_accessed = (rows_p * d_in * (in_item + out_item)
                          + n_row_tiles * 2 * d_in * d_hid_p * in_item   # re-streamed weights
                          + (2 * d_hid_p + 3 * d_in) * 4)
        cost = pl.CostEstimate(flops=4 * rows_p * d_in * d_hid_p,
                               transcendentals=rows_p,
                               bytes_accessed=int(bytes_accessed))

        out2d = pl.pallas_call(
            functools.partial(_ffn_streamed_kernel, eps=eps),
            out_shape=jax.ShapeDtypeStruct((rows_p, d_in), out_dtype),
            grid_spec=pltpu.PrefetchScalarGridSpec(
                num_scalar_prefetch=0,
                grid=(rows_p // tm, d_hid_p // tk_eff),
                in_specs=[
                    pl.BlockSpec((tm, d_in), lambda i, k: (i, 0)),    # x (invariant along k)
                    pl.BlockSpec((d_in, tk_eff), lambda i, k: (0, k)),  # w1 chunk
                    pl.BlockSpec((1, tk_eff), lambda i, k: (0, k)),     # b1 chunk
                    pl.BlockSpec((tk_eff, d_in), lambda i, k: (k, 0)),  # w2 chunk
                    pl.BlockSpec((1, d_in), lambda i, k: (0, 0)),       # b2
                    pl.BlockSpec((1, d_in), lambda i, k: (0, 0)),       # gamma
                    pl.BlockSpec((1, d_in), lambda i, k: (0, 0)),       # beta
                ],
                out_specs=pl.BlockSpec((tm, d_in), lambda i, k: (i, 0)),
                scratch_shapes=[pltpu.VMEM((tm, d_in), jnp.float32)],
            ),
            compiler_params=pltpu.CompilerParams(
                dimension_semantics=("parallel", "arbitrary"),
                vmem_limit_bytes=vmem_limit_bytes),
            cost_estimate=cost,
        )(x2d, w1c, b1_2d, w2c, b2_2d, g_2d, beta_2d)

    if out2d.shape[0] != rows:
        out2d = out2d[:rows]
    return out2d.reshape(B, L, d_in)


def _reference(x, w1, b1, w2, b2, gamma, beta, eps=1e-5):
    # Plain-JAX reference matching the PyTorch forward (eval mode).
    h = jnp.maximum(x @ w1 + b1, 0.0)
    y = h @ w2 + b2
    z = y + x
    mean = jnp.mean(z, axis=-1, keepdims=True)
    var = jnp.mean((z - mean) ** 2, axis=-1, keepdims=True)
    return (z - mean) / jnp.sqrt(var + eps) * gamma + beta


if __name__ == "__main__":
    # Small shapes: batch=2, seq=8, d_in=16, d_hid=32
    B, L, d_in, d_hid = 2, 8, 16, 32

    key = jax.random.PRNGKey(0)
    kx, k1, k2, k3, k4 = jax.random.split(key, 5)

    x = jax.random.normal(kx, (B, L, d_in), dtype=jnp.float32)

    # Conv1d(d_in, d_hid, 1) weight has shape (d_hid, d_in, 1); squeeze + transpose
    # to (d_in, d_hid) so the kernel can do x @ w1.
    w1 = jax.random.normal(k1, (d_in, d_hid), dtype=jnp.float32) * 0.1
    b1 = jax.random.normal(k2, (d_hid,), dtype=jnp.float32) * 0.1
    w2 = jax.random.normal(k3, (d_hid, d_in), dtype=jnp.float32) * 0.1
    b2 = jax.random.normal(k4, (d_in,), dtype=jnp.float32) * 0.1
    gamma = jnp.ones((d_in,), dtype=jnp.float32)
    beta = jnp.zeros((d_in,), dtype=jnp.float32)

    out = positionwise_ffn(x, w1, b1, w2, b2, gamma, beta)
    out = jax.block_until_ready(out)

    ref = _reference(x, w1, b1, w2, b2, gamma, beta)
    assert out.shape == (B, L, d_in)
    assert jnp.allclose(out, ref, atol=3e-5, rtol=3e-5), "mismatch vs reference"

    print("KERNEL_OK")
</pallas_src>

<mosaic_0001>
module attributes {stable_mosaic.version = 11 : i64} {
  func.func @_ffn_resident_kernel(%arg0: i32, %arg1: memref<16x16xf32, #tpu.memory_space<vmem>>, %arg2: memref<16x32xf32, #tpu.memory_space<vmem>>, %arg3: memref<1x32xf32, #tpu.memory_space<vmem>>, %arg4: memref<32x16xf32, #tpu.memory_space<vmem>>, %arg5: memref<1x16xf32, #tpu.memory_space<vmem>>, %arg6: memref<1x16xf32, #tpu.memory_space<vmem>>, %arg7: memref<1x16xf32, #tpu.memory_space<vmem>>, %arg8: memref<16x16xf32, #tpu.memory_space<vmem>>) attributes {dimension_semantics = [#tpu.dimension_semantics<parallel>], iteration_bounds = array<i64: 1>, scalar_prefetch = 0 : i64, scratch_operands = 0 : i64, tpu.core_type = #tpu.core_type<tc>, window_params = [{transform_indices = @transform_0, window_bounds = array<i64: 16, 16>}, {pipeline_mode = #tpu.pipeline_mode<synchronous>, transform_indices = @transform_1, window_bounds = array<i64: 16, 32>}, {pipeline_mode = #tpu.pipeline_mode<synchronous>, transform_indices = @transform_2, window_bounds = array<i64: 1, 32>}, {pipeline_mode = #tpu.pipeline_mode<synchronous>, transform_indices = @transform_3, window_bounds = array<i64: 32, 16>}, {pipeline_mode = #tpu.pipeline_mode<synchronous>, transform_indices = @transform_4, window_bounds = array<i64: 1, 16>}, {pipeline_mode = #tpu.pipeline_mode<synchronous>, transform_indices = @transform_5, window_bounds = array<i64: 1, 16>}, {pipeline_mode = #tpu.pipeline_mode<synchronous>, transform_indices = @transform_6, window_bounds = array<i64: 1, 16>}, {transform_indices = @transform_7, window_bounds = array<i64: 16, 16>}]} {
    %c0 = arith.constant 0 : index
    %c0_0 = arith.constant 0 : index
    %0 = vector.load %arg1[%c0, %c0_0] : memref<16x16xf32, #tpu.memory_space<vmem>>, vector<16x16xf32>
    %c0_1 = arith.constant 0 : index
    %c0_2 = arith.constant 0 : index
    %1 = vector.load %arg2[%c0_1, %c0_2] : memref<16x32xf32, #tpu.memory_space<vmem>>, vector<16x32xf32>
    %cst = arith.constant dense<0.000000e+00> : vector<16x32xf32>
    %2 = tpu.matmul %0, %1, %cst {dimension_numbers = #tpu.dot_dimension_numbers<[1], [0], [0], [1], [0, 0, 1, 1], [], []>} : vector<16x16xf32>, vector<16x32xf32>, vector<16x32xf32> -> vector<16x32xf32>
    %c0_3 = arith.constant 0 : index
    %c0_4 = arith.constant 0 : index
    %3 = vector.load %arg3[%c0_3, %c0_4] : memref<1x32xf32, #tpu.memory_space<vmem>>, vector<1x32xf32>
    %4 = vector.broadcast %3 : vector<1x32xf32> to vector<16x32xf32>
    %5 = arith.addf %2, %4 : vector<16x32xf32>
    %cst_5 = arith.constant 0.000000e+00 : f32
    %6 = vector.broadcast %cst_5 : f32 to vector<16x32xf32>
    %7 = arith.maximumf %5, %6 : vector<16x32xf32>
    %c0_6 = arith.constant 0 : index
    %c0_7 = arith.constant 0 : index
    %8 = vector.load %arg4[%c0_6, %c0_7] : memref<32x16xf32, #tpu.memory_space<vmem>>, vector<32x16xf32>
    %cst_8 = arith.constant dense<0.000000e+00> : vector<16x16xf32>
    %9 = tpu.matmul %7, %8, %cst_8 {dimension_numbers = #tpu.dot_dimension_numbers<[1], [0], [0], [1], [0, 0, 1, 1], [], []>} : vector<16x32xf32>, vector<32x16xf32>, vector<16x16xf32> -> vector<16x16xf32>
    %c0_9 = arith.constant 0 : index
    %c0_10 = arith.constant 0 : index
    %10 = vector.load %arg5[%c0_9, %c0_10] : memref<1x16xf32, #tpu.memory_space<vmem>>, vector<1x16xf32>
    %11 = vector.broadcast %10 : vector<1x16xf32> to vector<16x16xf32>
    %12 = arith.addf %9, %11 : vector<16x16xf32>
    %c0_11 = arith.constant 0 : index
    %c0_12 = arith.constant 0 : index
    %13 = vector.load %arg6[%c0_11, %c0_12] : memref<1x16xf32, #tpu.memory_space<vmem>>, vector<1x16xf32>
    %c0_13 = arith.constant 0 : index
    %c0_14 = arith.constant 0 : index
    %14 = vector.load %arg7[%c0_13, %c0_14] : memref<1x16xf32, #tpu.memory_space<vmem>>, vector<1x16xf32>
    %15 = arith.addf %12, %0 : vector<16x16xf32>
    %cst_15 = arith.constant dense<0.000000e+00> : vector<16xf32>
    %16 = vector.multi_reduction <add>, %15, %cst_15 [1] : vector<16x16xf32> to vector<16xf32>
    %17 = vector.shape_cast %16 : vector<16xf32> to vector<16x1xf32>
    %18 = arith.mulf %15, %15 : vector<16x16xf32>
    %cst_16 = arith.constant dense<0.000000e+00> : vector<16xf32>
    %19 = vector.multi_reduction <add>, %18, %cst_16 [1] : vector<16x16xf32> to vector<16xf32>
    %20 = vector.shape_cast %19 : vector<16xf32> to vector<16x1xf32>
    %cst_17 = arith.constant 6.250000e-02 : f32
    %21 = vector.broadcast %cst_17 : f32 to vector<16x1xf32>
    %22 = arith.mulf %17, %21 : vector<16x1xf32>
    %cst_18 = arith.constant 6.250000e-02 : f32
    %23 = vector.broadcast %cst_18 : f32 to vector<16x1xf32>
    %24 = arith.mulf %20, %23 : vector<16x1xf32>
    %25 = arith.mulf %22, %22 : vector<16x1xf32>
    %26 = arith.subf %24, %25 : vector<16x1xf32>
    %27 = vector.broadcast %22 : vector<16x1xf32> to vector<16x16xf32>
    %28 = arith.subf %15, %27 : vector<16x16xf32>
    %cst_19 = arith.constant 9.99999974E-6 : f32
    %29 = vector.broadcast %cst_19 : f32 to vector<16x1xf32>
    %30 = arith.addf %26, %29 : vector<16x1xf32>
    %31 = math.rsqrt %30 : vector<16x1xf32>
    %32 = vector.broadcast %31 : vector<16x1xf32> to vector<16x16xf32>
    %33 = arith.mulf %28, %32 : vector<16x16xf32>
    %34 = vector.broadcast %13 : vector<1x16xf32> to vector<16x16xf32>
    %35 = arith.mulf %33, %34 : vector<16x16xf32>
    %36 = vector.broadcast %14 : vector<1x16xf32> to vector<16x16xf32>
    %37 = arith.addf %35, %36 : vector<16x16xf32>
    %c0_20 = arith.constant 0 : index
    %c0_21 = arith.constant 0 : index
    %38 = vector.load %arg8[%c0_20, %c0_21] : memref<16x16xf32, #tpu.memory_space<vmem>>, vector<16x16xf32>
    tpu.vector_store %arg8[%c0_20, %c0_21], %37 {strides = array<i32>} : memref<16x16xf32, #tpu.memory_space<vmem>>, vector<16x16xf32>,
    return
  }
  func.func @transform_0(%arg0: i32) -> (i32, i32) {
    %c0_i32 = arith.constant 0 : i32
    %c0_i32_0 = arith.constant 0 : i32
    return %arg0, %c0_i32 : i32, i32
  }
  func.func @transform_1(%arg0: i32) -> (i32, i32) {
    %c0_i32 = arith.constant 0 : i32
    %c0_i32_0 = arith.constant 0 : i32
    %c0_i32_1 = arith.constant 0 : i32
    return %c0_i32, %c0_i32_0 : i32, i32
  }
  func.func @transform_2(%arg0: i32) -> (i32, i32) {
    %c0_i32 = arith.constant 0 : i32
    %c0_i32_0 = arith.constant 0 : i32
    %c0_i32_1 = arith.constant 0 : i32
    return %c0_i32, %c0_i32_0 : i32, i32
  }
  func.func @transform_3(%arg0: i32) -> (i32, i32) {
    %c0_i32 = arith.constant 0 : i32
    %c0_i32_0 = arith.constant 0 : i32
    %c0_i32_1 = arith.constant 0 : i32
    return %c0_i32, %c0_i32_0 : i32, i32
  }
  func.func @transform_4(%arg0: i32) -> (i32, i32) {
    %c0_i32 = arith.constant 0 : i32
    %c0_i32_0 = arith.constant 0 : i32
    %c0_i32_1 = arith.constant 0 : i32
    return %c0_i32, %c0_i32_0 : i32, i32
  }
  func.func @transform_5(%arg0: i32) -> (i32, i32) {
    %c0_i32 = arith.constant 0 : i32
    %c0_i32_0 = arith.constant 0 : i32
    %c0_i32_1 = arith.constant 0 : i32
    return %c0_i32, %c0_i32_0 : i32, i32
  }
  func.func @transform_6(%arg0: i32) -> (i32, i32) {
    %c0_i32 = arith.constant 0 : i32
    %c0_i32_0 = arith.constant 0 : i32
    %c0_i32_1 = arith.constant 0 : i32
    return %c0_i32, %c0_i32_0 : i32, i32
  }
  func.func @transform_7(%arg0: i32) -> (i32, i32) {
    %c0_i32 = arith.constant 0 : i32
    %c0_i32_0 = arith.constant 0 : i32
    return %arg0, %c0_i32 : i32, i32
  }
}

</mosaic_0001>

<bundles_post_ra>
// kernel: tpu_custom_call.1
= control target key start
LH: loop header
LB: loop body
LE: loop exit
PB: predicated region body
PF: predicated region fallthrough
CT: control target
= control target key end

     0   :  { %vm38_vm0 = vcmask 130048   ;;  %s461_s0 = inlined_call_operand.vmem [shape: f32[16,16], index: 0, kind: input, shape index: {}]   ;;  %s462_s1 = inlined_call_operand.vmem [shape: f32[16,32], index: 1, kind: input, shape index: {}]   ;;  %s463_s2 = inlined_call_operand.vmem [shape: f32[1,32], index: 2, kind: input, shape index: {}]   ;;  %s464_s3 = inlined_call_operand.vmem [shape: f32[32,16], index: 3, kind: input, shape index: {}]   ;;  %s465_s4 = inlined_call_operand.vmem [shape: f32[1,16], index: 4, kind: input, shape index: {}]   ;;  %s466_s5 = inlined_call_operand.vmem [shape: f32[1,16], index: 5, kind: input, shape index: {}]   ;;  %s467_s6 = inlined_call_operand.vmem [shape: f32[1,16], index: 6, kind: input, shape index: {}]   ;;  %s468_s7 = inlined_call_operand.hbm [shape: f32[16,16], index: 7, kind: output, shape index: {}]  }
   0x1   :  { %v29_v0 = vld [vmem:[%s462_s1] sm:$0xff]  ;;  %v30_v1 = vld [vmem:[%s462_s1 + $0x8] sm:$0xff] }
   0x2   :  { %v27_v2 = vld [vmem:[%s461_s0] sm:$0xff]  ;;  %v319_v3 = vpack.c.bf16 %v30_v1, %v29_v0  ;;  %v123_v5 = vld [vmem:[%s464_s3 + $0x8] sm:$0xff] }
   0x3   :  { %305 = vmatprep.mubr.msk.f32.mxu0 %vm38_vm0, %v27_v2  ;;  %v122_v4 = vld [vmem:[%s464_s3] sm:$0xff] }
   0x4   :  { %v323_v6 = vpack.c.bf16 %v123_v5, %v122_v4 }
   0x5   :  { %12 = vsyncpa [#allocation3], 0  ;;  %320 = vmatprep.subr.bf16.mxu0 %v319_v3  ;;  %v28_v7 = vld [vmem:[%s461_s0 + $0x8] sm:$0xff]  ;;  %v124_v8 = vld [vmem:[%s464_s3 + $0x10] sm:$0xff]  ;;  %vm133_vm1 = vcmask 261120   ;;  %s362_s20 = smov [#allocation2]  }
   0x6   :  { %322 = vmatpush3.bf16.msra.mxu0 %v319_v3  ;;  %324 = vmatprep.subr.bf16.mxu1 %v323_v6  ;;  %v125_v9 = vld [vmem:[%s464_s3 + $0x18] sm:$0xff]  ;;  %v283_v11 = vld [vmem:[%s463_s2] ss:$0 sm:$0xff]  ;;  %s272_s21 = sshll.u32 %s362_s20, 4  ;;  %s273_s21 = int_to_ptr.vmem [resolvable:$true] %s272_s21 }
   0x7   :  { %326 = vmatpush3.bf16.msra.mxu1 %v323_v6  ;;  %v327_v10 = vpack.c.bf16 %v125_v9, %v124_v8  ;;  %v286_v18 = vld [vmem:[%s465_s4] ss:$0 sm:$0xff]  ;;  %p343_p1 = scmp.lt.s32.totalorder %s273_s21, %s273_s21 }
   0x8   :  { %v289_v47 = vld [vmem:[%s466_s5] ss:$0 sm:$0xff]  ;;  %s338_s5 = scalar_lea.vmem %s273_s21, 256 }
   0x9   :  { %306 = vmatmul.mubr.msk.f32.vlgmr.msra.gmra.mrb[0].mxu0 %vm38_vm0, %v28_v7  ;;  %328 = vmatprep.subr.bf16.mxu1 %v327_v10  ;;  %v290_v49 = vld [vmem:[%s467_s6] ss:$0 sm:$0xff]  ;;  %p339_p0 = scmp.ne.s32.totalorder %s273_s21, %s338_s5  ;;  %p344_p2 = scmp.lt.s32.totalorder %s338_s5, %s338_s5 }
   0xb   :  { %330 = vmatpush3.bf16.msra.mxu1 %v327_v10  ;;  %p345_p3 = por %p344_p2, %p343_p1 }
   0xd   :  { %p346_p4 = pnand %p345_p3, %p339_p0 }
  0xdc   :  { %v307_v12 = vpop.f32.mrb[0].mxu0 }
  0xdd   :  { %v117_v13 = vadd.f32 %v307_v12, %v283_v11  ;;  %v111_v14 = vpop.f32.mrb[1].mxu0 }
  0xde   :  { %v112_v15 = vadd.f32 %v283_v11, %v111_v14 }
  0xdf   :  { %v121_v17 = vmax.f32 %v117_v13, 0.0 }
  0xe0   :  { %v120_v16 = vmax.f32 %v112_v15, 0.0 }
  0xe2   :  { %316 = vmatprep.mubr.msk.f32.mxu1 %vm133_vm1, %v120_v16 }
  0xe3   :  { %317 = vmatmul.mubr.msk.f32.vlgmr.msra.gmra.mrb[0].mxu1 %vm133_vm1, %v121_v17 }
 0x1b6   :  { %v318_v19 = vpop.f32.mrb[0].mxu1 }
 0x1b7   :  { %v212_v20 = vadd.f32 %v318_v19, %v286_v18  ;;  %v206_v21 = vpop.f32.mrb[1].mxu1 }
 0x1b8   :  { %v207_v22 = vadd.f32 %v286_v18, %v206_v21 }
 0x1b9   :  { %v218_v23 = vadd.f32 %v212_v20, %v28_v7 }
 0x1ba   :  { %v217_v24 = vadd.f32 %v207_v22, %v27_v2 }
 0x1bb   :  { %v226_v28 = vmul.f32 %v218_v23, %v218_v23  ;;  %v222_v29 = vsel %vm38_vm0, %v218_v23, 0.0 }
 0x1bc   :  { %v219_v25 = vsel %vm38_vm0, %v217_v24, 0.0  ;;  %v225_v26 = vmul.f32 %v217_v24, %v217_v24 }
 0x1bd   :  { %220 = vadd.xlane.f32.xlu0 %v219_v25  ;;  %v230_v30 = vsel %vm38_vm0, %v226_v28, 0.0 }
 0x1be   :  { %v227_v27 = vsel %vm38_vm0, %v225_v26, 0.0 }
 0x1bf   :  { %228 = vadd.xlane.f32.xlu1 %v227_v27 }
 0x1c1   :  { %223 = vadd.xlane.f32.xlu0 %v222_v29 }
 0x1c3   :  { %231 = vadd.xlane.f32.xlu1 %v230_v30 }
 0x24a   :  { %v221_v31 = vpop.xlane.xlu0 %220 }
 0x24b   :  { %v233_v32 = vmul.f32 0.0625, %v221_v31 }
 0x24c   :  { %v229_v33 = vpop.xlane.xlu1 %228 }
 0x24d   :  { %v237_v34 = vmul.f32 %v233_v32, %v233_v32  ;;  %v235_v35 = vmul.f32 0.0625, %v229_v33  ;;  %v241_v45 = vsub.f32 %v217_v24, %v233_v32 }
 0x24e   :  { %v224_v36 = vpop.xlane.xlu0 %223 }
 0x24f   :  { %v239_v37 = vsub.f32 %v235_v35, %v237_v34  ;;  %v234_v38 = vmul.f32 0.0625, %v224_v36 }
 0x250   :  { %v232_v39 = vpop.xlane.xlu1 %231 }
 0x251   :  { %v243_v40 = vadd.f32 1e-05, %v239_v37  ;;  %v238_v41 = vmul.f32 %v234_v38, %v234_v38  ;;  %v236_v42 = vmul.f32 0.0625, %v232_v39  ;;  %v242_v50 = vsub.f32 %v218_v23, %v234_v38 }
 0x253   :  { %334 = vrsqrt.f32 %v243_v40  ;;  %v240_v43 = vsub.f32 %v236_v42, %v238_v41 }
 0x255   :  { %v244_v44 = vadd.f32 1e-05, %v240_v43 }
 0x257   :  { %336 = vrsqrt.f32 %v244_v44 }
 0x25d   :  { %v335_v46 = vpop.eup %334 }
 0x25e   :  { %v247_v48 = vmul.f32 %v335_v46, %v241_v45 }
 0x260   :  { %v255_v51 = vmul.f32 %v289_v47, %v247_v48 }
 0x261   :  { %v337_v52 = vpop.eup %336 }
 0x262   :  { %v248_v53 = vmul.f32 %v337_v52, %v242_v50  ;;  %v263_v54 = vadd.f32 %v290_v49, %v255_v51 }
 0x264   :  { %v256_v55 = vmul.f32 %v289_v47, %v248_v53  ;;  %265 = vst.msk [vmem:[#allocation2] sm:$0xff] %vm38_vm0, %v263_v54 }
 0x266   :  { %v264_v56 = vadd.f32 %v290_v49, %v256_v55 }
 0x268   :  { %266 = vst.msk [vmem:[#allocation2 + $0x8] sm:$0xff] %vm38_vm0, %v264_v56 }
 0x269   :  { %349 = shalt.err (!%p346_p4)
}
 0x26a   :  { %s350_s23 = scalar_lea.hbm %s468_s7, 256 }
 0x26b   :  { %p351_p5 = scmp.ne.s32.totalorder %s468_s7, %s350_s23  ;;  %p354_p6 = scmp.lt.u32.totalorder %s350_s23, %s468_s7 }
 0x26d   :  { %p356_p7 = pnand %p354_p6, %p351_p5 }
 0x26f   :  { %359 = shalt.err (!%p356_p7)
}
 0x270   :  { %s363_s28 = smov 128   ;;  %s364_s29 = smov 8  }
 0x271   :  { %278 = dma.vmem_to_hbm [thread:$0]  %s273_s21, 256, %s468_s7, [#allocation3], %s363_s28, %s363_s28, %s364_s29  }
 0x272   :  { %360 = dma.done.wait [#allocation3], 256  }
 0x273   :  { %361 = vsyncadd [#allocation3], 4294967040 }
 0x274   :  { %282 = vsyncpa [#allocation3], 1 }

</bundles_post_ra>
